<compile_context>
chip_gen: v5e
topology: v5e:2x2
jax: 0.10.0
libtpu: 0.0.40
codegen_flags: <defaults>
</compile_context>

<pallas_src>
import jax
import jax.numpy as jnp
from jax import lax
from jax.experimental import pallas as pl
from jax.experimental.pallas import tpu as pltpu


# ----------------------------------------------------------------------------
# Shared in-kernel math: f(t, x) = Linear2(tanh(Linear1([x, I(t), t])))
# ----------------------------------------------------------------------------
def _ode_mlp(x, cur_bt, t_val, w1x, w1c, w1t, b1, w2, b2):
    """All args are values (already loaded from refs). Returns (B, state_dim) f32."""
    T = cur_bt.shape[1]

    # current_profile[:, int(t*(T-1)), :] as a one-hot lane select: fully
    # vectorized, no host sync, no dynamic-slice lowering required.
    ts = t_val * jnp.float32(T - 1)                                        # scalar
    lane = lax.broadcasted_iota(jnp.int32, (1, T), 1).astype(jnp.float32)  # (1, T)
    onehot = jnp.logical_and(ts >= lane, ts < lane + 1.0).astype(cur_bt.dtype)
    cur_col = jnp.sum(cur_bt * onehot, axis=1, keepdims=True)              # (B, 1)

    # Linear1 on concat([x, current, t]) without materializing the concat:
    # W1 was pre-split into x-rows (w1x), current row (w1c) and time row (w1t).
    h = jnp.dot(x, w1x, preferred_element_type=jnp.float32)                # (B, H)
    h = h + cur_col * w1c
    h = h + t_val * w1t
    h = jnp.tanh(h + b1)

    o = jnp.dot(h.astype(w2.dtype), w2, preferred_element_type=jnp.float32)
    return o + b2


def _split_w1(w1, state_dim):
    """Split W1 rows (done once at trace time, outside the kernel)."""
    return (w1[:state_dim, :],
            w1[state_dim:state_dim + 1, :],
            w1[state_dim + 1:state_dim + 2, :])


# ----------------------------------------------------------------------------
# Single forward evaluation (matches ODEFunc.forward(t, x))
# ----------------------------------------------------------------------------
def _ode_func_kernel(t_ref, x_ref, cur_ref, w1x_ref, w1c_ref, w1t_ref,
                     b1_ref, w2_ref, b2_ref, out_ref):
    out_ref[...] = _ode_mlp(
        x_ref[...].astype(jnp.float32), cur_ref[...], t_ref[0],
        w1x_ref[...], w1c_ref[...], w1t_ref[...],
        b1_ref[...], w2_ref[...], b2_ref[...],
    ).astype(out_ref.dtype)


def ode_func_forward(t, x, current_profile, params):
    """dx/dt = ODEFunc.forward(t, x). Fully jittable (no host sync on t)."""
    w1, b1, w2, b2 = params
    B, state_dim = x.shape
    T = current_profile.shape[1]
    cur_bt = current_profile.reshape(B, T)
    w1x, w1c, w1t = _split_w1(w1, state_dim)
    t_arr = jnp.asarray(t, dtype=jnp.float32).reshape(1)

    vmem = pl.BlockSpec(memory_space=pltpu.MemorySpace.VMEM)
    return pl.pallas_call(
        _ode_func_kernel,
        out_shape=jax.ShapeDtypeStruct((B, state_dim), x.dtype),
        in_specs=[pl.BlockSpec(memory_space=pltpu.MemorySpace.SMEM),  # t
                  vmem, vmem, vmem, vmem, vmem, vmem, vmem, vmem],
        out_specs=vmem,
    )(t_arr, x, cur_bt, w1x, w1c, w1t, b1, w2, b2)


# ----------------------------------------------------------------------------
# Fused Euler integration: N forward evaluations in a single pallas_call.
# Weights + current_profile stay VMEM-resident; state x is carried in the
# resident output block across grid steps.
# ----------------------------------------------------------------------------
def _ode_euler_kernel(sc_ref, x0_ref, cur_ref, w1x_ref, w1c_ref, w1t_ref,
                      b1_ref, w2_ref, b2_ref, x_ref):
    n = pl.program_id(0)

    @pl.when(n == 0)
    def _():
        x_ref[...] = x0_ref[...].astype(x_ref.dtype)

    t0 = sc_ref[0]
    dt = sc_ref[1]
    t_n = t0 + dt * n.astype(jnp.float32)

    x = x_ref[...].astype(jnp.float32)
    dx = _ode_mlp(x, cur_ref[...], t_n,
                  w1x_ref[...], w1c_ref[...], w1t_ref[...],
                  b1_ref[...], w2_ref[...], b2_ref[...])
    x_ref[...] = (x + dt * dx).astype(x_ref.dtype)


def ode_integrate_euler(x0, current_profile, params, t0, t1, num_steps):
    """x(t1) via explicit Euler with `num_steps` fused ODEFunc evaluations."""
    w1, b1, w2, b2 = params
    B, state_dim = x0.shape
    T = current_profile.shape[1]
    H = w1.shape[1]
    cur_bt = current_profile.reshape(B, T)
    w1x, w1c, w1t = _split_w1(w1, state_dim)

    dt = (float(t1) - float(t0)) / num_steps
    sc = jnp.asarray([t0, dt], dtype=jnp.float32)

    def const2d(shape):
        # Constant block index => tensor stays VMEM-resident across all steps.
        return pl.BlockSpec(shape, lambda n: (0, 0))

    return pl.pallas_call(
        _ode_euler_kernel,
        out_shape=jax.ShapeDtypeStruct((B, state_dim), x0.dtype),
        grid=(num_steps,),
        in_specs=[
            pl.BlockSpec(memory_space=pltpu.MemorySpace.SMEM),  # [t0, dt]
            const2d((B, state_dim)),                            # x0
            const2d((B, T)),                                    # current profile (resident)
            const2d((state_dim, H)),                            # W1 x-rows (resident)
            const2d((1, H)),                                    # W1 current row
            const2d((1, H)),                                    # W1 time row
            const2d((1, H)),                                    # b1
            const2d((H, state_dim)),                            # W2
            const2d((1, state_dim)),                            # b2
        ],
        out_specs=const2d((B, state_dim)),                      # x carried across steps
        compiler_params=pltpu.CompilerParams(
            dimension_semantics=("arbitrary",)),                # sequential (state carry)
    )(sc, x0, cur_bt, w1x, w1c, w1t, b1, w2, b2)


def init_params(key, state_dim, hidden_dim, dtype=jnp.float32):
    """Xavier-uniform weights, zero biases (matches _initialize_weights)."""
    din = state_dim + 2
    k1, k2 = jax.random.split(key)
    bound1 = (6.0 / (din + hidden_dim)) ** 0.5
    bound2 = (6.0 / (hidden_dim + state_dim)) ** 0.5
    w1 = jax.random.uniform(k1, (din, hidden_dim), dtype, -bound1, bound1)
    b1 = jnp.zeros((1, hidden_dim), dtype)
    w2 = jax.random.uniform(k2, (hidden_dim, state_dim), dtype, -bound2, bound2)
    b2 = jnp.zeros((1, state_dim), dtype)
    return w1, b1, w2, b2


if __name__ == "__main__":
    state_dim, hidden_dim, batch, T = 4, 32, 8, 16

    key = jax.random.PRNGKey(0)
    kx, kc, kp = jax.random.split(key, 3)
    x = jax.random.normal(kx, (batch, state_dim), jnp.float32)
    current_profile = jax.random.normal(kc, (batch, T, 1), jnp.float32)
    params = init_params(kp, state_dim, hidden_dim)
    w1, b1, w2, b2 = params

    # ---- single forward evaluation (exact ODEFunc.forward semantics) ----
    t = 0.5
    out = jax.block_until_ready(ode_func_forward(t, x, current_profile, params))

    time_idx = int(t * (T - 1))
    inp_ref = jnp.concatenate(
        [x, current_profile[:, time_idx, :], jnp.full((batch, 1), t, jnp.float32)],
        axis=-1)
    ref = jnp.tanh(inp_ref @ w1 + b1) @ w2 + b2
    assert out.shape == (batch, state_dim)
    assert jnp.allclose(out, ref, atol=1e-5, rtol=1e-5), float(jnp.max(jnp.abs(out - ref)))

    # ---- fused integration: 20 forward evals in one pallas_call ----
    t0, t1, num_steps = 0.0, 0.93, 20
    xN = jax.block_until_ready(
        ode_integrate_euler(x, current_profile, params, t0, t1, num_steps))

    dt32 = jnp.float32((t1 - t0) / num_steps)
    cur_bt = current_profile[:, :, 0]
    x_acc = x
    for n in range(num_steps):
        t_n = jnp.float32(t0) + dt32 * jnp.float32(n)
        tidx = jnp.floor(t_n * (T - 1)).astype(jnp.int32)
        cur = jnp.take(cur_bt, tidx, axis=1)[:, None]
        tcol = jnp.full((batch, 1), t_n, jnp.float32)
        inp_n = jnp.concatenate([x_acc, cur, tcol], axis=-1)
        dx = jnp.tanh(inp_n @ w1 + b1) @ w2 + b2
        x_acc = x_acc + dt32 * dx
    assert xN.shape == (batch, state_dim)
    assert jnp.allclose(xN, x_acc, atol=1e-4, rtol=1e-4), float(jnp.max(jnp.abs(xN - x_acc)))

    print("KERNEL_OK")
</pallas_src>

<mosaic_0001>
module attributes {stable_mosaic.version = 11 : i64} {
  func.func @_ode_func_kernel(%arg0: memref<1xf32, #tpu.memory_space<smem>>, %arg1: memref<8x4xf32, #tpu.memory_space<vmem>>, %arg2: memref<8x16xf32, #tpu.memory_space<vmem>>, %arg3: memref<4x32xf32, #tpu.memory_space<vmem>>, %arg4: memref<1x32xf32, #tpu.memory_space<vmem>>, %arg5: memref<1x32xf32, #tpu.memory_space<vmem>>, %arg6: memref<1x32xf32, #tpu.memory_space<vmem>>, %arg7: memref<32x4xf32, #tpu.memory_space<vmem>>, %arg8: memref<1x4xf32, #tpu.memory_space<vmem>>, %arg9: memref<8x4xf32, #tpu.memory_space<vmem>>) attributes {dimension_semantics = [], scalar_prefetch = 0 : i64, scratch_operands = 0 : i64, tpu.core_type = #tpu.core_type<tc>} {
    %c0 = arith.constant 0 : index
    %c0_0 = arith.constant 0 : index
    %0 = vector.load %arg1[%c0, %c0_0] : memref<8x4xf32, #tpu.memory_space<vmem>>, vector<8x4xf32>
    %c0_1 = arith.constant 0 : index
    %c0_2 = arith.constant 0 : index
    %1 = vector.load %arg2[%c0_1, %c0_2] : memref<8x16xf32, #tpu.memory_space<vmem>>, vector<8x16xf32>
    %c0_3 = arith.constant 0 : index
    %2 = memref.load %arg0[%c0_3] : memref<1xf32, #tpu.memory_space<smem>>
    %c0_4 = arith.constant 0 : index
    %c0_5 = arith.constant 0 : index
    %3 = vector.load %arg3[%c0_4, %c0_5] : memref<4x32xf32, #tpu.memory_space<vmem>>, vector<4x32xf32>
    %c0_6 = arith.constant 0 : index
    %c0_7 = arith.constant 0 : index
    %4 = vector.load %arg4[%c0_6, %c0_7] : memref<1x32xf32, #tpu.memory_space<vmem>>, vector<1x32xf32>
    %c0_8 = arith.constant 0 : index
    %c0_9 = arith.constant 0 : index
    %5 = vector.load %arg5[%c0_8, %c0_9] : memref<1x32xf32, #tpu.memory_space<vmem>>, vector<1x32xf32>
    %c0_10 = arith.constant 0 : index
    %c0_11 = arith.constant 0 : index
    %6 = vector.load %arg6[%c0_10, %c0_11] : memref<1x32xf32, #tpu.memory_space<vmem>>, vector<1x32xf32>
    %c0_12 = arith.constant 0 : index
    %c0_13 = arith.constant 0 : index
    %7 = vector.load %arg7[%c0_12, %c0_13] : memref<32x4xf32, #tpu.memory_space<vmem>>, vector<32x4xf32>
    %c0_14 = arith.constant 0 : index
    %c0_15 = arith.constant 0 : index
    %8 = vector.load %arg8[%c0_14, %c0_15] : memref<1x4xf32, #tpu.memory_space<vmem>>, vector<1x4xf32>
    %cst = arith.constant 1.500000e+01 : f32
    %9 = arith.mulf %2, %cst : f32
    %10 = tpu.iota {dimensions = array<i32: 1>} : vector<1x16xi32>
    %11 = arith.sitofp %10 : vector<1x16xi32> to vector<1x16xf32>
    %12 = vector.broadcast %9 : f32 to vector<1x16xf32>
    %13 = arith.cmpf oge, %12, %11 : vector<1x16xf32>
    %cst_16 = arith.constant 1.000000e+00 : f32
    %14 = vector.broadcast %cst_16 : f32 to vector<1x16xf32>
    %15 = arith.addf %11, %14 : vector<1x16xf32>
    %16 = vector.broadcast %9 : f32 to vector<1x16xf32>
    %17 = arith.cmpf olt, %16, %15 : vector<1x16xf32>
    %18 = arith.andi %13, %17 : vector<1x16xi1>
    %19 = arith.extui %18 : vector<1x16xi1> to vector<1x16xi32>
    %20 = arith.sitofp %19 : vector<1x16xi32> to vector<1x16xf32>
    %21 = vector.broadcast %20 : vector<1x16xf32> to vector<8x16xf32>
    %22 = arith.mulf %1, %21 : vector<8x16xf32>
    %cst_17 = arith.constant dense<0.000000e+00> : vector<8xf32>
    %23 = vector.multi_reduction <add>, %22, %cst_17 [1] : vector<8x16xf32> to vector<8xf32>
    %24 = vector.shape_cast %23 : vector<8xf32> to vector<8x1xf32>
    %cst_18 = arith.constant dense<0.000000e+00> : vector<8x32xf32>
    %25 = tpu.matmul %0, %3, %cst_18 {dimension_numbers = #tpu.dot_dimension_numbers<[1], [0], [0], [1], [0, 0, 1, 1], [], []>} : vector<8x4xf32>, vector<4x32xf32>, vector<8x32xf32> -> vector<8x32xf32>
    %26 = vector.broadcast %24 : vector<8x1xf32> to vector<8x32xf32>
    %27 = vector.broadcast %4 : vector<1x32xf32> to vector<8x32xf32>
    %28 = arith.mulf %26, %27 : vector<8x32xf32>
    %29 = arith.addf %25, %28 : vector<8x32xf32>
    %30 = vector.broadcast %2 : f32 to vector<1x32xf32>
    %31 = arith.mulf %30, %5 : vector<1x32xf32>
    %32 = vector.broadcast %31 : vector<1x32xf32> to vector<8x32xf32>
    %33 = arith.addf %29, %32 : vector<8x32xf32>
    %34 = vector.broadcast %6 : vector<1x32xf32> to vector<8x32xf32>
    %35 = arith.addf %33, %34 : vector<8x32xf32>
    %36 = math.tanh %35 : vector<8x32xf32>
    %cst_19 = arith.constant dense<0.000000e+00> : vector<8x4xf32>
    %37 = tpu.matmul %36, %7, %cst_19 {dimension_numbers = #tpu.dot_dimension_numbers<[1], [0], [0], [1], [0, 0, 1, 1], [], []>} : vector<8x32xf32>, vector<32x4xf32>, vector<8x4xf32> -> vector<8x4xf32>
    %38 = vector.broadcast %8 : vector<1x4xf32> to vector<8x4xf32>
    %39 = arith.addf %37, %38 : vector<8x4xf32>
    %c0_20 = arith.constant 0 : index
    %c0_21 = arith.constant 0 : index
    %40 = vector.load %arg9[%c0_20, %c0_21] : memref<8x4xf32, #tpu.memory_space<vmem>>, vector<8x4xf32>
    tpu.vector_store %arg9[%c0_20, %c0_21], %39 {strides = array<i32>} : memref<8x4xf32, #tpu.memory_space<vmem>>, vector<8x4xf32>,
    return
  }
}

</mosaic_0001>

<bundles_post_ra>
// kernel: tpu_custom_call.1
= control target key start
LH: loop header
LB: loop body
LE: loop exit
PB: predicated region body
PF: predicated region fallthrough
CT: control target
= control target key end

     0   :  { %vm69_vm0 = vcmask 1043456   ;;  %vm65_vm1 = vcmask 31744   ;;  %v46_v0 = vlaneseq  ;;  %v146_v8 = vmov 0.0   ;;  %s241_s3 = inlined_call_operand.vmem [shape: f32[4,32], index: 3, kind: input, shape index: {}]   ;;  %s242_s1 = inlined_call_operand.vmem [shape: f32[8,4], index: 1, kind: input, shape index: {}]   ;;  %s243_s0 = inlined_call_operand.<no memory space> [shape: f32[1], index: 0, kind: input, shape index: {}]   ;;  %s244_s4 = inlined_call_operand.vmem [shape: f32[1,32], index: 4, kind: input, shape index: {}]   ;;  %s245_s6 = inlined_call_operand.vmem [shape: f32[1,32], index: 6, kind: input, shape index: {}]   ;;  %s246_s2 = inlined_call_operand.vmem [shape: f32[8,16], index: 2, kind: input, shape index: {}]   ;;  %s247_s8 = inlined_call_operand.vmem [shape: f32[1,4], index: 8, kind: input, shape index: {}]   ;;  %s248_s7 = inlined_call_operand.vmem [shape: f32[32,4], index: 7, kind: input, shape index: {}]   ;;  %s249_s5 = inlined_call_operand.vmem [shape: f32[1,32], index: 5, kind: input, shape index: {}]   ;;  %s250_s9 = inlined_call_operand.vmem [shape: f32[8,4], index: 9, kind: output, shape index: {}]  }
   0x1   :  { %v36_v1 = vld [vmem:[%s241_s3] sm:$0xf]  ;;  %s45_s15 = smul.f32 15.0, %s243_s0  ;;  %vm57_vm5 = vcmask 130048   ;;  %v43_v12 = vld [vmem:[%s248_s7 + $0x18] sm:$0xff]  ;;  %v42_v13 = vld [vmem:[%s248_s7 + $0x10] sm:$0xff]  ;;  %v93_v17 = vstv %s243_s0 }
   0x2   :  { %v33_v2 = vld [vmem:[%s242_s1] sm:$0xff]  ;;  %137 = vmatpush.msk.msra.mxu0 %vm69_vm0, %v36_v1  ;;  %v47_v3 = vand.u32 127, %v46_v0  ;;  %123 = vmatpush.msra.mxu1 %v43_v12  ;;  %v41_v14 = vld [vmem:[%s248_s7 + $0x8] sm:$0xff]  ;;  %vm107_vm6 = vcmask 261120  }
   0x3   :  { %138 = vmatmul.msk.f32.vlgmr.msra.gmra.mxu0 %vm65_vm1, %v33_v2  ;;  %v49_v4 = vstv %s45_s15  ;;  %v34_v7 = vld [vmem:[%s246_s2] sm:$0xff] }
   0x4   :  { %v48_v5 = vcvt.s32.f32 %v47_v3  ;;  %124 = vmatpush.msra.mxu1 %v42_v13  ;;  %v40_v15 = vld [vmem:[%s248_s7] sm:$0xff] }
   0x5   :  { %v38_v16 = vld [vmem:[%s249_s5] sm:$0x1] }
   0x6   :  { %vm50_vm2 = vcmp.ge.f32.partialorder %v49_v4, %v48_v5  ;;  %v51_v6 = vadd.f32 1.0, %v48_v5  ;;  %125 = vmatpush.msra.mxu1 %v41_v14  ;;  %v141_v18 = vld [vmem:[%s244_s4] ss:$0 sm:$0xff]  ;;  %v94_v19 = vmul.f32 %v93_v17, %v38_v16 }
   0x7   :  { %v142_v25 = vld [vmem:[%s245_s6] ss:$0 sm:$0xff] }
   0x8   :  { %vm52_vm3 = vcmp.lt.f32.partialorder %v49_v4, %v51_v6  ;;  %126 = vmatpush.msra.mxu1 %v40_v15  ;;  %v96_v23 = vperm.slane %v94_v19, 0  ;;  %v143_v29 = vld [vmem:[%s247_s8] ss:$0 sm:$0xff] }
   0x9   :  { %vm53_vm4 = vmand %vm50_vm2, %vm52_vm3 }
   0xa   :  { %v136_v9 = vsel %vm53_vm4, 1.0, %v146_v8 }
   0xb   :  { %v56_v10 = vmul.f32 %v136_v9, %v34_v7 }
   0xd   :  { %v58_v11 = vsel %vm57_vm5, %v56_v10, 0.0 }
   0xe   :  { %59 = vadd.xlane.f32.xlu0 %v58_v11 }
  0x80   :  { %v90_v21 = vpop.f32.mrf.mxu0 }
  0x81   :  { %v60_v20 = vpop.xlane.xlu0 %59 }
  0x82   :  { %v64_v22 = vmul.f32 %v141_v18, %v60_v20 }
  0x84   :  { %v91_v24 = vadd.f32 %v90_v21, %v64_v22 }
  0x86   :  { %v98_v26 = vadd.f32 %v96_v23, %v91_v24 }
  0x88   :  { %v102_v27 = vadd.f32 %v142_v25, %v98_v26 }
  0x8a   :  { %144 = vtanh.f32 %v102_v27 }
  0x90   :  { %v145_v28 = vpop.eup %144 }
  0x91   :  { %139 = vmatmul.msk.f32.vlgmr.msra.gmra.mxu1 %vm107_vm6, %v145_v28 }
 0x10e   :  { %v128_v30 = vpop.f32.mrf.mxu1 }
 0x10f   :  { %v129_v31 = vadd.f32 %v143_v29, %v128_v30 }
 0x111   :  { %131 = vst.msk [vmem:[%s250_s9] sm:$0xff] %vm65_vm1, %v129_v31 }

</bundles_post_ra>
